<compile_context>
chip_gen: v5e
topology: v5e:2x2
jax: 0.10.0
libtpu: 0.0.40
codegen_flags: <defaults>
</compile_context>

<pallas_src>
import jax
import jax.numpy as jnp
from jax.experimental import pallas as pl
from jax.experimental.pallas import tpu as pltpu


def _round_up(n, m):
    return (n + m - 1) // m * m


# ---------------------------------------------------------------------------
# Kernel (built with the static weight-slab layout closed over)
# ---------------------------------------------------------------------------
def _make_kernel(layout, input_dim):
    D = input_dim          # attention width (q)
    C = input_dim // 4     # k / v width

    def kernel(x_ref, slab_ref, o_ref, k_scr, v_scr):
        def take(name):
            r, nrow, ncol = layout[name]          # static python ints
            # Note: contraction dim sits on lanes of the weight slice, so we
            # slice exactly ncol lanes (full-128-lane loads don't apply here).
            return slab_ref[pl.ds(r, nrow), pl.ds(0, ncol)]

        x = x_ref[...]                            # (D, TB) f32, batch on lanes

        # ---- Attention(dim, dim): fused q/k/v projection (one MXU pass) ----
        qkv = jnp.dot(take("w_qkv"), x,
                      preferred_element_type=jnp.float32) + take("b_qkv")
        q = qkv[:D]                               # (D, TB)
        k = qkv[D:D + C]                          # (C, TB)
        v = qkv[D + C:]                           # (C, TB)
        k_scr[pl.ds(0, C), :] = k
        v_scr[pl.ds(0, C), :] = v

        # exact per-element row max of s[j,c] = q[j]*k[c]:
        #   max_c = max(q*kmax, q*kmin) -> single vmax, no cmp+select
        kmax = jnp.max(k, axis=0, keepdims=True)  # (1, TB)
        kmin = jnp.min(k, axis=0, keepdims=True)  # (1, TB)
        m = jnp.maximum(q * kmax, q * kmin)       # (D, TB)

        def c_body(c, carry):
            l, acc = carry
            kc = k_scr[pl.ds(c, 1), :]            # (1, TB) sublane-row read
            vc = v_scr[pl.ds(c, 1), :]
            e = jnp.exp(q * kc - m)               # (D, TB) lane-dense exp
            return l + e, acc + vc * e

        l, acc = jax.lax.fori_loop(
            0, C, c_body, (jnp.zeros_like(q), jnp.zeros_like(q)), unroll=True)

        o = acc * pl.reciprocal(l, approx=True)   # EUP reciprocal
        h = take("gamma") * o + x                 # gamma residual, (D, TB)

        # ---- Block(dim, 32) -> Block(32, 16): y^T = W(out,in) @ h^T + b ----
        def block(h, p):
            o1 = jnp.dot(take(p + "_w1"), h,
                         preferred_element_type=jnp.float32) + take(p + "_b1")
            o2 = jnp.dot(take(p + "_w2"), o1,
                         preferred_element_type=jnp.float32) + take(p + "_b2")
            o3 = jnp.dot(take(p + "_w3"), o2,
                         preferred_element_type=jnp.float32) + take(p + "_b3")
            z = o1 + o3
            # TODO(synk): Dropout(0.5) treated as identity (eval-mode forward).
            return jnp.maximum(z, 0.2 * z)        # LeakyReLU(0.2), single vmax

        h = block(h, "b1")
        h = block(h, "b2")

        # ---- fused Linear(16,8) @ Linear(8,1) + Sigmoid: lane-dense (1,TB) --
        y = jnp.dot(take("w_head"), h,
                    preferred_element_type=jnp.float32) + take("b_head")
        o_ref[...] = jax.nn.sigmoid(y)

    return kernel


# ---------------------------------------------------------------------------
# Wrapper
# ---------------------------------------------------------------------------
def _tpu_vmem_bytes():
    try:
        return int(getattr(pltpu.get_tpu_info(), "vmem_capacity_bytes",
                           64 * 1024 * 1024))
    except Exception:
        return 64 * 1024 * 1024


def _pick_batch_tile(batch, max_tile=None):
    """Lane-dense (multiple-of-128) batch tile, generation aware.

    After the batch->lane transpose the per-tile footprint is only
    ~15 * TB * 4 B of f32 intermediates, so these caps are conservative even
    on v7x's 64 MiB VMEM.
    """
    vmem = _tpu_vmem_bytes()
    cap = 4096 if vmem <= 64 * 1024 * 1024 else 8192
    if max_tile is not None:
        cap = min(cap, max(_round_up(max_tile, 128), 128))
    bp = _round_up(max(batch, 1), 128)
    if bp <= cap:
        return bp                                 # single grid step
    tb = cap
    steps = pl.cdiv(bp, tb)
    if steps % 2 == 1:
        # keep the step count even so v7x's two TensorCores split the batch
        # evenly; costs at most one extra (cheap) grid step elsewhere.
        steps += 1
        tb = _round_up(pl.cdiv(bp, steps), 128)
    return tb


def discriminator_forward(x, slab, layout, max_tile=None):
    """x: (B, input_dim) f32; slab/layout: packed weights from pack_params."""
    B, D = x.shape
    TB = _pick_batch_tile(B, max_tile)
    Bp = _round_up(B, TB)
    xT = x.T                                      # batch onto the lane axis
    if Bp != B:
        xT = jnp.pad(xT, ((0, 0), (0, Bp - B)))
    Cp = _round_up(D // 4, 8)
    # stay well below physical VMEM (v7x has only 64 MiB per TC)
    vmem_limit = min(_tpu_vmem_bytes() * 3 // 4, 96 * 1024 * 1024)

    out = pl.pallas_call(
        _make_kernel(layout, D),
        out_shape=jax.ShapeDtypeStruct((1, Bp), jnp.float32),
        grid=(Bp // TB,),
        in_specs=[
            pl.BlockSpec((D, TB), lambda i: (0, i)),       # batch-tiled x^T
            pl.BlockSpec(slab.shape, lambda i: (0, 0)),    # resident weight slab
        ],
        out_specs=pl.BlockSpec((1, TB), lambda i: (0, i)),  # lane-dense output
        scratch_shapes=[pltpu.VMEM((Cp, TB), jnp.float32),  # k^T rows
                        pltpu.VMEM((Cp, TB), jnp.float32)], # v^T rows
        compiler_params=pltpu.CompilerParams(
            dimension_semantics=("parallel",),             # both TCs on v7x
            vmem_limit_bytes=vmem_limit,
        ),
    )(xT, slab)
    return out[0, :B].reshape(B, 1)


# ---------------------------------------------------------------------------
# Parameter init (PyTorch-Linear-style uniform bounds) and slab packing
# ---------------------------------------------------------------------------
def _linear_params(key, fan_in, fan_out):
    kw, kb = jax.random.split(key)
    bound = 1.0 / jnp.sqrt(jnp.float32(fan_in))
    w = jax.random.uniform(kw, (fan_in, fan_out), jnp.float32, -bound, bound)
    b = jax.random.uniform(kb, (1, fan_out), jnp.float32, -bound, bound)
    return w, b


def make_params(input_dim, key):
    assert input_dim <= 64 and input_dim % 4 == 0, "demo covers the input_dim <= 64 branch"
    keys = jax.random.split(key, 11)
    params = []
    # Attention(dim, dim): fc1 (d->d), fc2 (d->d//4), fc3 (d->d//4)
    params += _linear_params(keys[0], input_dim, input_dim)
    params += _linear_params(keys[1], input_dim, input_dim // 4)
    params += _linear_params(keys[2], input_dim, input_dim // 4)
    # Block(dim, 32): fc1 (d->32), fc2 (32->16), fc3 (16->32)
    params += _linear_params(keys[3], input_dim, 32)
    params += _linear_params(keys[4], 32, 16)
    params += _linear_params(keys[5], 16, 32)
    # Block(32, 16): fc1 (32->16), fc2 (16->8), fc3 (8->16)
    params += _linear_params(keys[6], 32, 16)
    params += _linear_params(keys[7], 16, 8)
    params += _linear_params(keys[8], 8, 16)
    # Linear(16, 8), Linear(8, 1)
    params += _linear_params(keys[9], 16, 8)
    params += _linear_params(keys[10], 8, 1)
    gamma = jnp.zeros((1, 1), jnp.float32)     # nn.Parameter(torch.tensor(0.0))
    return gamma, params


def pack_params(gamma, params, input_dim):
    """Transpose to (out,in), fuse q/k/v + head Linears, pack into one (R,128) slab."""
    (aw1, ab1, aw2, ab2, aw3, ab3,
     b1w1, b1b1, b1w2, b1b2, b1w3, b1b3,
     b2w1, b2b1, b2w2, b2b2, b2w3, b2b3,
     l1w, l1b, l2w, l2b) = params

    w_qkv = jnp.concatenate([aw1, aw2, aw3], axis=1).T      # (d + d//2, d)
    b_qkv = jnp.concatenate([ab1, ab2, ab3], axis=1).T      # (d + d//2, 1)
    w_head = (l1w @ l2w).T                                   # (1, 16)
    b_head = (l1b @ l2w + l2b).T                             # (1, 1)

    entries = [
        ("w_qkv", w_qkv), ("b_qkv", b_qkv),
        ("b1_w1", b1w1.T), ("b1_b1", b1b1.T), ("b1_w2", b1w2.T), ("b1_b2", b1b2.T),
        ("b1_w3", b1w3.T), ("b1_b3", b1b3.T),
        ("b2_w1", b2w1.T), ("b2_b1", b2b1.T), ("b2_w2", b2w2.T), ("b2_b2", b2b2.T),
        ("b2_w3", b2w3.T), ("b2_b3", b2b3.T),
        ("w_head", w_head), ("b_head", b_head),
        ("gamma", jnp.reshape(gamma, (1, 1))),
    ]
    layout = {}
    row = 0
    for name, arr in entries:
        nrow, ncol = arr.shape
        assert ncol <= 128
        layout[name] = (row, nrow, ncol)
        row += _round_up(nrow, 8)                            # sublane-aligned rows
    slab = jnp.zeros((_round_up(row, 8), 128), jnp.float32)
    for name, arr in entries:
        r, nrow, ncol = layout[name]
        slab = slab.at[r:r + nrow, :ncol].set(arr.astype(jnp.float32))
    return slab, layout


# ---------------------------------------------------------------------------
# Pure-JAX reference (unfused, same math as the PyTorch module)
# ---------------------------------------------------------------------------
def reference_forward(x, gamma, p):
    (aw1, ab1, aw2, ab2, aw3, ab3,
     b1w1, b1b1, b1w2, b1b2, b1w3, b1b3,
     b2w1, b2b1, b2w2, b2b2, b2w3, b2b3,
     l1w, l1b, l2w, l2b) = p
    q = x @ aw1 + ab1
    k = x @ aw2 + ab2
    v = x @ aw3 + ab3
    s = q[:, :, None] * k[:, None, :]
    w = jax.nn.softmax(s, axis=-1)
    o = jnp.sum(w * v[:, None, :], axis=-1)
    h = gamma[0, 0] * o + x

    def blk(h, w1, b1, w2, b2, w3, b3):
        o1 = h @ w1 + b1
        o3 = (o1 @ w2 + b2) @ w3 + b3
        z = o1 + o3
        return jnp.where(z >= 0, z, 0.2 * z)

    h = blk(h, b1w1, b1b1, b1w2, b1b2, b1w3, b1b3)
    h = blk(h, b2w1, b2b1, b2w2, b2b2, b2w3, b2b3)
    h = h @ l1w + l1b
    h = h @ l2w + l2b
    return jax.nn.sigmoid(h)


if __name__ == "__main__":
    INPUT_DIM = 32
    BATCH = 8

    key = jax.random.PRNGKey(0)
    kx, kp, kb, km = jax.random.split(key, 4)
    x = jax.random.normal(kx, (BATCH, INPUT_DIM), jnp.float32)
    gamma0, params = make_params(INPUT_DIM, kp)

    # Small batch (single grid step). gamma=0.0 is the faithful PyTorch init;
    # gamma=0.5 additionally exercises the attention path numerics.
    for gval in (0.0, 0.5):
        gamma = jnp.full((1, 1), gval, jnp.float32)
        slab, layout = pack_params(gamma, params, INPUT_DIM)
        out = jax.block_until_ready(discriminator_forward(x, slab, layout))
        ref = reference_forward(x, gamma, params)
        assert out.shape == (BATCH, 1)
        assert jnp.allclose(out, ref, atol=5e-3), (gval, out, ref)

    gamma = jnp.full((1, 1), 0.5, jnp.float32)
    slab, layout = pack_params(gamma, params, INPUT_DIM)

    # Multi-step grid path (forced small tile) to cover the index maps / padding.
    xm = jax.random.normal(km, (1000, INPUT_DIM), jnp.float32)
    outm = jax.block_until_ready(discriminator_forward(xm, slab, layout, max_tile=256))
    refm = reference_forward(xm, gamma, params)
    assert outm.shape == (1000, 1)
    assert jnp.allclose(outm, refm, atol=5e-3)

    # Larger batch exercising the default generation-aware tile choice.
    BIG = 4500
    xb = jax.random.normal(kb, (BIG, INPUT_DIM), jnp.float32)
    outb = jax.block_until_ready(discriminator_forward(xb, slab, layout))
    refb = reference_forward(xb, gamma, params)
    assert outb.shape == (BIG, 1)
    assert jnp.allclose(outb, refb, atol=5e-3)

    print("KERNEL_OK")
</pallas_src>

<mosaic_0001>
module attributes {stable_mosaic.version = 11 : i64} {
  func.func @kernel(%arg0: i32, %arg1: memref<32x128xf32, #tpu.memory_space<vmem>>, %arg2: memref<360x128xf32, #tpu.memory_space<vmem>>, %arg3: memref<1x128xf32, #tpu.memory_space<vmem>>, %arg4: memref<8x128xf32, #tpu.memory_space<vmem>>, %arg5: memref<8x128xf32, #tpu.memory_space<vmem>>) attributes {dimension_semantics = [#tpu.dimension_semantics<parallel>], iteration_bounds = array<i64: 1>, scalar_prefetch = 0 : i64, scratch_operands = 2 : i64, tpu.core_type = #tpu.core_type<tc>, window_params = [{transform_indices = @transform_0, window_bounds = array<i64: 32, 128>}, {pipeline_mode = #tpu.pipeline_mode<synchronous>, transform_indices = @transform_1, window_bounds = array<i64: 360, 128>}, {transform_indices = @transform_2, window_bounds = array<i64: 1, 128>}]} {
    %c0 = arith.constant 0 : index
    %c0_0 = arith.constant 0 : index
    %0 = vector.load %arg1[%c0, %c0_0] : memref<32x128xf32, #tpu.memory_space<vmem>>, vector<32x128xf32>
    %c0_1 = arith.constant 0 : index
    %c0_2 = arith.constant 0 : index
    %1 = vector.load %arg2[%c0_1, %c0_2] : memref<360x128xf32, #tpu.memory_space<vmem>>, vector<48x32xf32>
    %cst = arith.constant dense<0.000000e+00> : vector<48x128xf32>
    %2 = tpu.matmul %1, %0, %cst {dimension_numbers = #tpu.dot_dimension_numbers<[1], [0], [0], [1], [0, 0, 1, 1], [], []>} : vector<48x32xf32>, vector<32x128xf32>, vector<48x128xf32> -> vector<48x128xf32>
    %c48 = arith.constant 48 : index
    %c0_3 = arith.constant 0 : index
    %3 = vector.load %arg2[%c48, %c0_3] : memref<360x128xf32, #tpu.memory_space<vmem>>, vector<48x1xf32>
    %4 = vector.broadcast %3 : vector<48x1xf32> to vector<48x128xf32>
    %5 = arith.addf %2, %4 : vector<48x128xf32>
    %6 = vector.extract_strided_slice %5 {offsets = [0, 0], sizes = [32, 128], strides = [1, 1]} : vector<48x128xf32> to vector<32x128xf32>
    %7 = vector.extract_strided_slice %5 {offsets = [32, 0], sizes = [8, 128], strides = [1, 1]} : vector<48x128xf32> to vector<8x128xf32>
    %8 = vector.extract_strided_slice %5 {offsets = [40, 0], sizes = [8, 128], strides = [1, 1]} : vector<48x128xf32> to vector<8x128xf32>
    %c0_4 = arith.constant 0 : index
    %c0_5 = arith.constant 0 : index
    %9 = vector.load %arg4[%c0_4, %c0_5] : memref<8x128xf32, #tpu.memory_space<vmem>>, vector<8x128xf32>
    tpu.vector_store %arg4[%c0_4, %c0_5], %7 {strides = array<i32>} : memref<8x128xf32, #tpu.memory_space<vmem>>, vector<8x128xf32>,
    %c0_6 = arith.constant 0 : index
    %c0_7 = arith.constant 0 : index
    %10 = vector.load %arg5[%c0_6, %c0_7] : memref<8x128xf32, #tpu.memory_space<vmem>>, vector<8x128xf32>
    tpu.vector_store %arg5[%c0_6, %c0_7], %8 {strides = array<i32>} : memref<8x128xf32, #tpu.memory_space<vmem>>, vector<8x128xf32>,
    %cst_8 = arith.constant dense<0xFF800000> : vector<128xf32>
    %11 = vector.multi_reduction <maximumf>, %7, %cst_8 [0] : vector<8x128xf32> to vector<128xf32>
    %12 = vector.shape_cast %11 : vector<128xf32> to vector<1x128xf32>
    %cst_9 = arith.constant dense<0x7F800000> : vector<128xf32>
    %13 = vector.multi_reduction <minimumf>, %7, %cst_9 [0] : vector<8x128xf32> to vector<128xf32>
    %14 = vector.shape_cast %13 : vector<128xf32> to vector<1x128xf32>
    %15 = vector.broadcast %12 : vector<1x128xf32> to vector<32x128xf32>
    %16 = arith.mulf %6, %15 : vector<32x128xf32>
    %17 = vector.broadcast %14 : vector<1x128xf32> to vector<32x128xf32>
    %18 = arith.mulf %6, %17 : vector<32x128xf32>
    %19 = arith.maximumf %16, %18 : vector<32x128xf32>
    %cst_10 = arith.constant 0.000000e+00 : f32
    %20 = vector.broadcast %cst_10 : f32 to vector<32x128xf32>
    %cst_11 = arith.constant 0.000000e+00 : f32
    %21 = vector.broadcast %cst_11 : f32 to vector<32x128xf32>
    %c0_i32 = arith.constant 0 : i32
    %22 = arith.index_cast %c0_i32 : i32 to index
    %c0_12 = arith.constant 0 : index
    %23 = vector.load %arg4[%22, %c0_12] : memref<8x128xf32, #tpu.memory_space<vmem>>, vector<1x128xf32>
    %24 = arith.index_cast %c0_i32 : i32 to index
    %c0_13 = arith.constant 0 : index
    %25 = vector.load %arg5[%24, %c0_13] : memref<8x128xf32, #tpu.memory_space<vmem>>, vector<1x128xf32>
    %26 = vector.broadcast %23 : vector<1x128xf32> to vector<32x128xf32>
    %27 = arith.mulf %6, %26 : vector<32x128xf32>
    %28 = arith.subf %27, %19 : vector<32x128xf32>
    %29 = math.exp %28 : vector<32x128xf32>
    %30 = arith.addf %20, %29 : vector<32x128xf32>
    %31 = vector.broadcast %25 : vector<1x128xf32> to vector<32x128xf32>
    %32 = arith.mulf %31, %29 : vector<32x128xf32>
    %33 = arith.addf %21, %32 : vector<32x128xf32>
    %c1_i32 = arith.constant 1 : i32
    %34 = arith.index_cast %c1_i32 : i32 to index
    %c0_14 = arith.constant 0 : index
    %35 = vector.load %arg4[%34, %c0_14] : memref<8x128xf32, #tpu.memory_space<vmem>>, vector<1x128xf32>
    %36 = arith.index_cast %c1_i32 : i32 to index
    %c0_15 = arith.constant 0 : index
    %37 = vector.load %arg5[%36, %c0_15] : memref<8x128xf32, #tpu.memory_space<vmem>>, vector<1x128xf32>
    %38 = vector.broadcast %35 : vector<1x128xf32> to vector<32x128xf32>
    %39 = arith.mulf %6, %38 : vector<32x128xf32>
    %40 = arith.subf %39, %19 : vector<32x128xf32>
    %41 = math.exp %40 : vector<32x128xf32>
    %42 = arith.addf %30, %41 : vector<32x128xf32>
    %43 = vector.broadcast %37 : vector<1x128xf32> to vector<32x128xf32>
    %44 = arith.mulf %43, %41 : vector<32x128xf32>
    %45 = arith.addf %33, %44 : vector<32x128xf32>
    %c2_i32 = arith.constant 2 : i32
    %46 = arith.index_cast %c2_i32 : i32 to index
    %c0_16 = arith.constant 0 : index
    %47 = vector.load %arg4[%46, %c0_16] : memref<8x128xf32, #tpu.memory_space<vmem>>, vector<1x128xf32>
    %48 = arith.index_cast %c2_i32 : i32 to index
    %c0_17 = arith.constant 0 : index
    %49 = vector.load %arg5[%48, %c0_17] : memref<8x128xf32, #tpu.memory_space<vmem>>, vector<1x128xf32>
    %50 = vector.broadcast %47 : vector<1x128xf32> to vector<32x128xf32>
    %51 = arith.mulf %6, %50 : vector<32x128xf32>
    %52 = arith.subf %51, %19 : vector<32x128xf32>
    %53 = math.exp %52 : vector<32x128xf32>
    %54 = arith.addf %42, %53 : vector<32x128xf32>
    %55 = vector.broadcast %49 : vector<1x128xf32> to vector<32x128xf32>
    %56 = arith.mulf %55, %53 : vector<32x128xf32>
    %57 = arith.addf %45, %56 : vector<32x128xf32>
    %c3_i32 = arith.constant 3 : i32
    %58 = arith.index_cast %c3_i32 : i32 to index
    %c0_18 = arith.constant 0 : index
    %59 = vector.load %arg4[%58, %c0_18] : memref<8x128xf32, #tpu.memory_space<vmem>>, vector<1x128xf32>
    %60 = arith.index_cast %c3_i32 : i32 to index
    %c0_19 = arith.constant 0 : index
    %61 = vector.load %arg5[%60, %c0_19] : memref<8x128xf32, #tpu.memory_space<vmem>>, vector<1x128xf32>
    %62 = vector.broadcast %59 : vector<1x128xf32> to vector<32x128xf32>
    %63 = arith.mulf %6, %62 : vector<32x128xf32>
    %64 = arith.subf %63, %19 : vector<32x128xf32>
    %65 = math.exp %64 : vector<32x128xf32>
    %66 = arith.addf %54, %65 : vector<32x128xf32>
    %67 = vector.broadcast %61 : vector<1x128xf32> to vector<32x128xf32>
    %68 = arith.mulf %67, %65 : vector<32x128xf32>
    %69 = arith.addf %57, %68 : vector<32x128xf32>
    %c4_i32 = arith.constant 4 : i32
    %70 = arith.index_cast %c4_i32 : i32 to index
    %c0_20 = arith.constant 0 : index
    %71 = vector.load %arg4[%70, %c0_20] : memref<8x128xf32, #tpu.memory_space<vmem>>, vector<1x128xf32>
    %72 = arith.index_cast %c4_i32 : i32 to index
    %c0_21 = arith.constant 0 : index
    %73 = vector.load %arg5[%72, %c0_21] : memref<8x128xf32, #tpu.memory_space<vmem>>, vector<1x128xf32>
    %74 = vector.broadcast %71 : vector<1x128xf32> to vector<32x128xf32>
    %75 = arith.mulf %6, %74 : vector<32x128xf32>
    %76 = arith.subf %75, %19 : vector<32x128xf32>
    %77 = math.exp %76 : vector<32x128xf32>
    %78 = arith.addf %66, %77 : vector<32x128xf32>
    %79 = vector.broadcast %73 : vector<1x128xf32> to vector<32x128xf32>
    %80 = arith.mulf %79, %77 : vector<32x128xf32>
    %81 = arith.addf %69, %80 : vector<32x128xf32>
    %c5_i32 = arith.constant 5 : i32
    %82 = arith.index_cast %c5_i32 : i32 to index
    %c0_22 = arith.constant 0 : index
    %83 = vector.load %arg4[%82, %c0_22] : memref<8x128xf32, #tpu.memory_space<vmem>>, vector<1x128xf32>
    %84 = arith.index_cast %c5_i32 : i32 to index
    %c0_23 = arith.constant 0 : index
    %85 = vector.load %arg5[%84, %c0_23] : memref<8x128xf32, #tpu.memory_space<vmem>>, vector<1x128xf32>
    %86 = vector.broadcast %83 : vector<1x128xf32> to vector<32x128xf32>
    %87 = arith.mulf %6, %86 : vector<32x128xf32>
    %88 = arith.subf %87, %19 : vector<32x128xf32>
    %89 = math.exp %88 : vector<32x128xf32>
    %90 = arith.addf %78, %89 : vector<32x128xf32>
    %91 = vector.broadcast %85 : vector<1x128xf32> to vector<32x128xf32>
    %92 = arith.mulf %91, %89 : vector<32x128xf32>
    %93 = arith.addf %81, %92 : vector<32x128xf32>
    %c6_i32 = arith.constant 6 : i32
    %94 = arith.index_cast %c6_i32 : i32 to index
    %c0_24 = arith.constant 0 : index
    %95 = vector.load %arg4[%94, %c0_24] : memref<8x128xf32, #tpu.memory_space<vmem>>, vector<1x128xf32>
    %96 = arith.index_cast %c6_i32 : i32 to index
    %c0_25 = arith.constant 0 : index
    %97 = vector.load %arg5[%96, %c0_25] : memref<8x128xf32, #tpu.memory_space<vmem>>, vector<1x128xf32>
    %98 = vector.broadcast %95 : vector<1x128xf32> to vector<32x128xf32>
    %99 = arith.mulf %6, %98 : vector<32x128xf32>
    %100 = arith.subf %99, %19 : vector<32x128xf32>
    %101 = math.exp %100 : vector<32x128xf32>
    %102 = arith.addf %90, %101 : vector<32x128xf32>
    %103 = vector.broadcast %97 : vector<1x128xf32> to vector<32x128xf32>
    %104 = arith.mulf %103, %101 : vector<32x128xf32>
    %105 = arith.addf %93, %104 : vector<32x128xf32>
    %c7_i32 = arith.constant 7 : i32
    %106 = arith.index_cast %c7_i32 : i32 to index
    %c0_26 = arith.constant 0 : index
    %107 = vector.load %arg4[%106, %c0_26] : memref<8x128xf32, #tpu.memory_space<vmem>>, vector<1x128xf32>
    %108 = arith.index_cast %c7_i32 : i32 to index
    %c0_27 = arith.constant 0 : index
    %109 = vector.load %arg5[%108, %c0_27] : memref<8x128xf32, #tpu.memory_space<vmem>>, vector<1x128xf32>
    %110 = vector.broadcast %107 : vector<1x128xf32> to vector<32x128xf32>
    %111 = arith.mulf %6, %110 : vector<32x128xf32>
    %112 = arith.subf %111, %19 : vector<32x128xf32>
    %113 = math.exp %112 : vector<32x128xf32>
    %114 = arith.addf %102, %113 : vector<32x128xf32>
    %115 = vector.broadcast %109 : vector<1x128xf32> to vector<32x128xf32>
    %116 = arith.mulf %115, %113 : vector<32x128xf32>
    %117 = arith.addf %105, %116 : vector<32x128xf32>
    %c8_i32 = arith.constant 8 : i32
    %118 = tpu.reciprocal %114 {approx = true} : vector<32x128xf32> -> vector<32x128xf32>
    %119 = arith.mulf %117, %118 : vector<32x128xf32>
    %c352 = arith.constant 352 : index
    %c0_28 = arith.constant 0 : index
    %120 = vector.load %arg2[%c352, %c0_28] : memref<360x128xf32, #tpu.memory_space<vmem>>, vector<1x1xf32>
    %121 = vector.broadcast %120 : vector<1x1xf32> to vector<32x128xf32>
    %122 = arith.mulf %121, %119 : vector<32x128xf32>
    %123 = arith.addf %122, %0 : vector<32x128xf32>
    %c96 = arith.constant 96 : index
    %c0_29 = arith.constant 0 : index
    %124 = vector.load %arg2[%c96, %c0_29] : memref<360x128xf32, #tpu.memory_space<vmem>>, vector<32x32xf32>
    %cst_30 = arith.constant dense<0.000000e+00> : vector<32x128xf32>
    %125 = tpu.matmul %124, %123, %cst_30 {dimension_numbers = #tpu.dot_dimension_numbers<[1], [0], [0], [1], [0, 0, 1, 1], [], []>} : vector<32x32xf32>, vector<32x128xf32>, vector<32x128xf32> -> vector<32x128xf32>
    %c128 = arith.constant 128 : index
    %c0_31 = arith.constant 0 : index
    %126 = vector.load %arg2[%c128, %c0_31] : memref<360x128xf32, #tpu.memory_space<vmem>>, vector<32x1xf32>
    %127 = vector.broadcast %126 : vector<32x1xf32> to vector<32x128xf32>
    %128 = arith.addf %125, %127 : vector<32x128xf32>
    %c160 = arith.constant 160 : index
    %c0_32 = arith.constant 0 : index
    %129 = vector.load %arg2[%c160, %c0_32] : memref<360x128xf32, #tpu.memory_space<vmem>>, vector<16x32xf32>
    %cst_33 = arith.constant dense<0.000000e+00> : vector<16x128xf32>
    %130 = tpu.matmul %129, %128, %cst_33 {dimension_numbers = #tpu.dot_dimension_numbers<[1], [0], [0], [1], [0, 0, 1, 1], [], []>} : vector<16x32xf32>, vector<32x128xf32>, vector<16x128xf32> -> vector<16x128xf32>
    %c176 = arith.constant 176 : index
    %c0_34 = arith.constant 0 : index
    %131 = vector.load %arg2[%c176, %c0_34] : memref<360x128xf32, #tpu.memory_space<vmem>>, vector<16x1xf32>
    %132 = vector.broadcast %131 : vector<16x1xf32> to vector<16x128xf32>
    %133 = arith.addf %130, %132 : vector<16x128xf32>
    %c192 = arith.constant 192 : index
    %c0_35 = arith.constant 0 : index
    %134 = vector.load %arg2[%c192, %c0_35] : memref<360x128xf32, #tpu.memory_space<vmem>>, vector<32x16xf32>
    %cst_36 = arith.constant dense<0.000000e+00> : vector<32x128xf32>
    %135 = tpu.matmul %134, %133, %cst_36 {dimension_numbers = #tpu.dot_dimension_numbers<[1], [0], [0], [1], [0, 0, 1, 1], [], []>} : vector<32x16xf32>, vector<16x128xf32>, vector<32x128xf32> -> vector<32x128xf32>
    %c224 = arith.constant 224 : index
    %c0_37 = arith.constant 0 : index
    %136 = vector.load %arg2[%c224, %c0_37] : memref<360x128xf32, #tpu.memory_space<vmem>>, vector<32x1xf32>
    %137 = vector.broadcast %136 : vector<32x1xf32> to vector<32x128xf32>
    %138 = arith.addf %135, %137 : vector<32x128xf32>
    %139 = arith.addf %128, %138 : vector<32x128xf32>
    %cst_38 = arith.constant 2.000000e-01 : f32
    %140 = vector.broadcast %cst_38 : f32 to vector<32x128xf32>
    %141 = arith.mulf %140, %139 : vector<32x128xf32>
    %142 = arith.maximumf %139, %141 : vector<32x128xf32>
    %c256 = arith.constant 256 : index
    %c0_39 = arith.constant 0 : index
    %143 = vector.load %arg2[%c256, %c0_39] : memref<360x128xf32, #tpu.memory_space<vmem>>, vector<16x32xf32>
    %cst_40 = arith.constant dense<0.000000e+00> : vector<16x128xf32>
    %144 = tpu.matmul %143, %142, %cst_40 {dimension_numbers = #tpu.dot_dimension_numbers<[1], [0], [0], [1], [0, 0, 1, 1], [], []>} : vector<16x32xf32>, vector<32x128xf32>, vector<16x128xf32> -> vector<16x128xf32>
    %c272 = arith.constant 272 : index
    %c0_41 = arith.constant 0 : index
    %145 = vector.load %arg2[%c272, %c0_41] : memref<360x128xf32, #tpu.memory_space<vmem>>, vector<16x1xf32>
    %146 = vector.broadcast %145 : vector<16x1xf32> to vector<16x128xf32>
    %147 = arith.addf %144, %146 : vector<16x128xf32>
    %c288 = arith.constant 288 : index
    %c0_42 = arith.constant 0 : index
    %148 = vector.load %arg2[%c288, %c0_42] : memref<360x128xf32, #tpu.memory_space<vmem>>, vector<8x16xf32>
    %cst_43 = arith.constant dense<0.000000e+00> : vector<8x128xf32>
    %149 = tpu.matmul %148, %147, %cst_43 {dimension_numbers = #tpu.dot_dimension_numbers<[1], [0], [0], [1], [0, 0, 1, 1], [], []>} : vector<8x16xf32>, vector<16x128xf32>, vector<8x128xf32> -> vector<8x128xf32>
    %c296 = arith.constant 296 : index
    %c0_44 = arith.constant 0 : index
    %150 = vector.load %arg2[%c296, %c0_44] : memref<360x128xf32, #tpu.memory_space<vmem>>, vector<8x1xf32>
    %151 = vector.broadcast %150 : vector<8x1xf32> to vector<8x128xf32>
    %152 = arith.addf %149, %151 : vector<8x128xf32>
    %c304 = arith.constant 304 : index
    %c0_45 = arith.constant 0 : index
    %153 = vector.load %arg2[%c304, %c0_45] : memref<360x128xf32, #tpu.memory_space<vmem>>, vector<16x8xf32>
    %cst_46 = arith.constant dense<0.000000e+00> : vector<16x128xf32>
    %154 = tpu.matmul %153, %152, %cst_46 {dimension_numbers = #tpu.dot_dimension_numbers<[1], [0], [0], [1], [0, 0, 1, 1], [], []>} : vector<16x8xf32>, vector<8x128xf32>, vector<16x128xf32> -> vector<16x128xf32>
    %c320 = arith.constant 320 : index
    %c0_47 = arith.constant 0 : index
    %155 = vector.load %arg2[%c320, %c0_47] : memref<360x128xf32, #tpu.memory_space<vmem>>, vector<16x1xf32>
    %156 = vector.broadcast %155 : vector<16x1xf32> to vector<16x128xf32>
    %157 = arith.addf %154, %156 : vector<16x128xf32>
    %158 = arith.addf %147, %157 : vector<16x128xf32>
    %cst_48 = arith.constant 2.000000e-01 : f32
    %159 = vector.broadcast %cst_48 : f32 to vector<16x128xf32>
    %160 = arith.mulf %159, %158 : vector<16x128xf32>
    %161 = arith.maximumf %158, %160 : vector<16x128xf32>
    %c336 = arith.constant 336 : index
    %c0_49 = arith.constant 0 : index
    %162 = vector.load %arg2[%c336, %c0_49] : memref<360x128xf32, #tpu.memory_space<vmem>>, vector<1x16xf32>
    %cst_50 = arith.constant dense<0.000000e+00> : vector<1x128xf32>
    %163 = tpu.matmul %162, %161, %cst_50 {dimension_numbers = #tpu.dot_dimension_numbers<[1], [0], [0], [1], [0, 0, 1, 1], [], []>} : vector<1x16xf32>, vector<16x128xf32>, vector<1x128xf32> -> vector<1x128xf32>
    %c344 = arith.constant 344 : index
    %c0_51 = arith.constant 0 : index
    %164 = vector.load %arg2[%c344, %c0_51] : memref<360x128xf32, #tpu.memory_space<vmem>>, vector<1x1xf32>
    %165 = vector.broadcast %164 : vector<1x1xf32> to vector<1x128xf32>
    %166 = arith.addf %163, %165 : vector<1x128xf32>
    %167 = arith.negf %166 : vector<1x128xf32>
    %168 = math.exp %167 : vector<1x128xf32>
    %cst_52 = arith.constant 1.000000e+00 : f32
    %169 = vector.broadcast %cst_52 : f32 to vector<1x128xf32>
    %170 = arith.addf %169, %168 : vector<1x128xf32>
    %171 = arith.divf %169, %170 : vector<1x128xf32>
    %c0_53 = arith.constant 0 : index
    %c0_54 = arith.constant 0 : index
    %172 = vector.load %arg3[%c0_53, %c0_54] : memref<1x128xf32, #tpu.memory_space<vmem>>, vector<1x128xf32>
    tpu.vector_store %arg3[%c0_53, %c0_54], %171 {strides = array<i32>} : memref<1x128xf32, #tpu.memory_space<vmem>>, vector<1x128xf32>,
    return
  }
  func.func @transform_0(%arg0: i32) -> (i32, i32) {
    %c0_i32 = arith.constant 0 : i32
    %c0_i32_0 = arith.constant 0 : i32
    return %c0_i32, %arg0 : i32, i32
  }
  func.func @transform_1(%arg0: i32) -> (i32, i32) {
    %c0_i32 = arith.constant 0 : i32
    %c0_i32_0 = arith.constant 0 : i32
    %c0_i32_1 = arith.constant 0 : i32
    return %c0_i32, %c0_i32_0 : i32, i32
  }
  func.func @transform_2(%arg0: i32) -> (i32, i32) {
    %c0_i32 = arith.constant 0 : i32
    %c0_i32_0 = arith.constant 0 : i32
    return %c0_i32, %arg0 : i32, i32
  }
}

</mosaic_0001>

<bundles_post_ra>
// kernel: tpu_custom_call.1
= control target key start
LH: loop header
LB: loop body
LE: loop exit
PB: predicated region body
PF: predicated region fallthrough
CT: control target
= control target key end

     0   :  { %7 = vsyncpa [#allocation5], 0  ;;  %s1282_s0 = inlined_call_operand.hbm [shape: f32[32,128], index: 0, kind: input, shape index: {}]   ;;  %s1283_s1 = inlined_call_operand.hbm [shape: f32[360,128], index: 1, kind: input, shape index: {}]   ;;  %s1284_s2 = inlined_call_operand.hbm [shape: f32[1,128], index: 2, kind: output, shape index: {}]  }
   0x1   :  { %8 = vsyncpa [#allocation8], 0 }
   0x2   :  { %9 = vsyncpa [#allocation6], 0  ;;  %s14_s11 = sshll.u32 %s1282_s0, 4  ;;  %s1036_s12 = smov [#allocation4]   ;;  %s15_s11 = int_to_ptr.hbm [resolvable:$true] %s14_s11 }
   0x3   :  { %s16_s13 = sshll.u32 %s1036_s12, 4  ;;  %s27_s16 = sshll.u32 %s1283_s1, 4  ;;  %s17_s13 = int_to_ptr.vmem [resolvable:$true] %s16_s13  ;;  %s28_s16 = int_to_ptr.hbm [resolvable:$true] %s27_s16 }
   0x4   :  { %s1037_s17 = smov 128   ;;  %s1038_s18 = smov 8  }
   0x5   :  { %22 = dma.hbm_to_vmem [thread:$0]  %s15_s11, 512, %s17_s13, [#allocation5], %s1037_s17, %s1037_s17, %s1038_s18  }
   0x6   :  { %s1039_s19 = smov [#allocation7]  }
   0x7   :  { %s29_s20 = sshll.u32 %s1039_s19, 4  ;;  %s30_s20 = int_to_ptr.vmem [resolvable:$true] %s29_s20 }
   0x8   :  { %35 = dma.hbm_to_vmem [thread:$0]  %s28_s16, 5760, %s30_s20, [#allocation8], %s1037_s17, %s1037_s17, %s1038_s18  }
   0x9   :  { %1030 = dma.done.wait [#allocation5], 512  }
   0xa   :  { %1031 = vsyncadd [#allocation5], 4294966784 }
   0xb   :  { %1032 = dma.done.wait [#allocation8], 5760  }
   0xc   :  { %1033 = vsyncadd [#allocation8], 4294961536  ;;  %v1040_v0 = vmov 0   ;;  %v58_v1 = vld [vmem:[#allocation7 + $0x50] sm:$0xff]  ;;  %v1063_v2 = vld [vmem:[#allocation4 + $0x18] sm:$0xff]  ;;  %vm90_vm0 = vcmask 261120  }
   0xd   :  { %863 = vset.pattern.permute.xlu0 %v1040_v0  ;;  %864 = vset.pattern.permute.xlu1 %v1040_v0  ;;  %v1065_v3 = vld [vmem:[#allocation4 + $0x10] sm:$0xff]  ;;  %v1068_v4 = vld [vmem:[#allocation4 + $0x8] sm:$0xff]  ;;  %v56_v5 = vld [vmem:[#allocation7 + $0x40] sm:$0xff]  ;;  %vm587_vm1 = vcmask 130048   ;;  %vm728_vm2 = vcmask 64512   ;;  %s1041_s1 = smov [#allocation9]  }
   0xe   :  { %865 = vset.pattern.permute.xlu2 %v1040_v0  ;;  %82 = vperm.xlu0 %863, %v58_v1   ;;  %v1071_v6 = vld [vmem:[#allocation4] sm:$0xff]  ;;  %v57_v8 = vld [vmem:[#allocation7 + $0x48] sm:$0xff]  ;;  %v55_v9 = vld [vmem:[#allocation7 + $0x38] sm:$0xff]  ;;  %s819_s21 = sshll.u32 %s1041_s1, 4  ;;  %s821_s24 = sshll.u32 %s1284_s2, 4  ;;  %s820_s21 = int_to_ptr.vmem [resolvable:$true] %s819_s21  ;;  %s822_s24 = int_to_ptr.hbm [resolvable:$true] %s821_s24 }
   0xf   :  { %121 = vmatpush.msra.mxu0 %v1063_v2  ;;  %72 = vperm.xlu1 %864, %v56_v5   ;;  %v48_v7 = vld [vmem:[#allocation7] sm:$0xff]  ;;  %v54_v10 = vld [vmem:[#allocation7 + $0x30] sm:$0xff]  ;;  %v49_v11 = vld [vmem:[#allocation7 + $0x8] sm:$0xff] }
  0x10   :  { %62 = vperm.xlu2 %865, %v54_v10   ;;  %v454_v12 = vld [vmem:[#allocation7 + $0x98] sm:$0xff]  ;;  %v453_v13 = vld [vmem:[#allocation7 + $0x90] sm:$0xff]  ;;  %v451_v16 = vld [vmem:[#allocation7 + $0x80] sm:$0xff] }
  0x11   :  { %122 = vmatpush.msra.mxu0 %v1065_v3  ;;  %v59_v14 = vld [vmem:[#allocation7 + $0x58] sm:$0xff]  ;;  %v50_v15 = vld [vmem:[#allocation7 + $0x10] sm:$0xff]  ;;  %v452_v18 = vld [vmem:[#allocation7 + $0x88] sm:$0xff] }
  0x12   :  { %v519_v17 = vld [vmem:[#allocation7 + $0xb8] sm:$0xff]  ;;  %v518_v21 = vld [vmem:[#allocation7 + $0xb0] sm:$0xff]  ;;  %v52_v23 = vld [vmem:[#allocation7 + $0x20] sm:$0xff] }
  0x13   :  { %123 = vmatpush.msra.mxu0 %v1068_v4  ;;  %v51_v19 = vld [vmem:[#allocation7 + $0x18] sm:$0xff]  ;;  %v565_v22 = vld [vmem:[#allocation7 + $0xf0] sm:$0xff]  ;;  %v563_v24 = vld [vmem:[#allocation7 + $0xe0] sm:$0xff] }
  0x14   :  { %v566_v20 = vld [vmem:[#allocation7 + $0xf8] sm:$0xff]  ;;  %v564_v25 = vld [vmem:[#allocation7 + $0xe8] sm:$0xff]  ;;  %v643_v29 = vld [vmem:[#allocation7 + $0x110] sm:$0xff] }
  0x15   :  { %124 = vmatpush.msra.mxu0 %v1071_v6  ;;  %v644_v26 = vld [vmem:[#allocation7 + $0x118] sm:$0xff]  ;;  %v53_v27 = vld [vmem:[#allocation7 + $0x28] sm:$0xff]  ;;  %v716_v32 = vld [vmem:[#allocation7 + $0x140] sm:$0xff] }
  0x16   :  { %832 = vmatmul.msk.f32.vlgmr.msra.gmra.mxu0 %vm90_vm0, %v48_v7  ;;  %77 = vperm.xlu0 %863, %v57_v8   ;;  %v685_v28 = vld [vmem:[#allocation7 + $0x128] sm:$0xff]  ;;  %v765_v31 = vld [vmem:[#allocation7 + $0x158] sm:$0x1]  ;;  %v434_v34 = vld [vmem:[#allocation7 + $0x160] sm:$0x1] }
  0x17   :  { %67 = vperm.xlu1 %864, %v55_v9   ;;  %v717_v30 = vld [vmem:[#allocation7 + $0x148] sm:$0xff]  ;;  %855 = vpush %v434_v34 }
  0x18   :  { %87 = vperm.xlu2 %865, %v59_v14  }
  0x1e   :  { %833 = vmatmul.msk.f32.gmra.mxu0 %vm90_vm0, %v49_v11  ;;  %472 = vperm.xlu0 %863, %v454_v12  }
  0x1f   :  { %467 = vperm.xlu1 %864, %v453_v13  }
  0x20   :  { %462 = vperm.xlu2 %865, %v452_v18  }
  0x26   :  { %834 = vmatmul.msk.f32.gmra.mxu0 %vm90_vm0, %v50_v15  ;;  %457 = vperm.xlu0 %863, %v451_v16  }
  0x27   :  { %527 = vperm.xlu1 %864, %v519_v17  }
  0x28   :  { %522 = vperm.xlu2 %865, %v518_v21  }
  0x2e   :  { %835 = vmatmul.msk.f32.gmra.mxu0 %vm90_vm0, %v51_v19  ;;  %584 = vperm.xlu0 %863, %v566_v20  }
  0x2f   :  { %579 = vperm.xlu1 %864, %v565_v22  }
  0x30   :  { %574 = vperm.xlu2 %865, %v564_v25  }
  0x36   :  { %836 = vmatmul.msk.f32.gmra.mxu0 %vm90_vm0, %v52_v23  ;;  %569 = vperm.xlu0 %863, %v563_v24  }
  0x37   :  { %652 = vperm.xlu1 %864, %v644_v26  }
  0x38   :  { %647 = vperm.xlu2 %865, %v643_v29  }
  0x3e   :  { %837 = vmatmul.msk.f32.gmra.mxu0 %vm90_vm0, %v53_v27  ;;  %688 = vperm.xlu0 %863, %v685_v28  }
  0x3f   :  { %725 = vperm.xlu1 %864, %v717_v30  }
  0x40   :  { %720 = vperm.xlu2 %865, %v716_v32  }
  0x46   :  { %768 = vperm.xlu0 %863, %v765_v31  }
  0x48   :  { %s856_s0 = spop %855 }
  0x6a   :  { %v63_v38 = vpop.permute.xlu2 %62 }
  0x72   :  { %v88_v48 = vpop.permute.xlu2 %87 }
  0x80   :  { %v83_v39 = vpop.permute.xlu0 %82 }
  0x81   :  { %v73_v40 = vpop.permute.xlu1 %72 }
  0x88   :  { %v78_v50 = vpop.permute.xlu0 %77 }
  0x89   :  { %v68_v54 = vpop.permute.xlu1 %67 }
  0x93   :  { %v126_v33 = vpop.f32.mrf.mxu0 }
  0x94   :  { %v1089_v62 = vadd.f32 %v126_v33, %v63_v38 }
  0x9b   :  { %v129_v35 = vpop.f32.mrf.mxu0 }
  0x9c   :  { %v1083_v57 = vadd.f32 %v129_v35, %v68_v54 }
  0xa3   :  { %v132_v36 = vpop.f32.mrf.mxu0 }
  0xa4   :  { %v1085_v58 = vadd.f32 %v132_v36, %v73_v40 }
  0xab   :  { %v135_v37 = vpop.f32.mrf.mxu0 }
  0xac   :  { %v136_v55 = vadd.f32 %v135_v37, %v78_v50  ;;  %v1145_v50 = vstv %s856_s0 }
  0xb3   :  { %v138_v41 = vpop.f32.mrf.mxu0 }
  0xb4   :  { %v139_v42 = vadd.f32 %v138_v41, %v83_v39 }
  0xb6   :  { %144 = vst [vmem:[#allocation2] sm:$0xff] %v139_v42  ;;  %v146_v43 = vrot.slane %v139_v42, 4 }
  0xb8   :  { %v147_v44 = vmax.f32 %v139_v42, %v146_v43  ;;  %v153_v45 = vmin.f32 %v139_v42, %v146_v43 }
  0xba   :  { %v148_v46 = vrot.slane %v147_v44, 2  ;;  %v154_v47 = vrot.slane %v153_v45, 2 }
  0xbb   :  { %v141_v49 = vpop.f32.mrf.mxu0 }
  0xbc   :  { %v149_v51 = vmax.f32 %v147_v44, %v148_v46  ;;  %v155_v52 = vmin.f32 %v153_v45, %v154_v47  ;;  %v142_v53 = vadd.f32 %v141_v49, %v88_v48 }
  0xbd   :  { %v1081_v56 = vld [vmem:[#allocation2] ss:$0 sm:$0xff]  ;;  %v1087_v61 = vld [vmem:[#allocation2 + $0x1] ss:$0 sm:$0xff]  ;;  %v1092_v0 = vld [vmem:[#allocation2 + $0x2] ss:$0 sm:$0xff] }
  0xbe   :  { %v150_v59 = vrot.slane %v149_v51, 1  ;;  %v156_v60 = vrot.slane %v155_v52, 1  ;;  %145 = vst [vmem:[#allocation3] sm:$0xff] %v142_v53  ;;  %v176_v63 = vmul.f32 %v1081_v56, %v136_v55  ;;  %v1094_v7 = vld [vmem:[#allocation2 + $0x3] ss:$0 sm:$0xff]  ;;  %v175_v9 = vmul.f32 %v1081_v56, %v1085_v58 }
  0xbf   :  { %v1096_v8 = vld [vmem:[#allocation2 + $0x4] ss:$0 sm:$0xff]  ;;  %v1102_v10 = vmul.f32 %v1081_v56, %v1083_v57  ;;  %v208_v11 = vmul.f32 %v1087_v61, %v136_v55  ;;  %v240_v12 = vmul.f32 %v1092_v0, %v136_v55  ;;  %v1106_v13 = vld [vmem:[#allocation2 + $0x5] ss:$0 sm:$0xff]  ;;  %v207_v14 = vmul.f32 %v1087_v61, %v1085_v58  ;;  %v1115_v20 = vld [vmem:[#allocation2 + $0x6] ss:$0 sm:$0xff] }
  0xc0   :  { %v151_v1 = vmax.f32 %v149_v51, %v150_v59  ;;  %v157_v5 = vmin.f32 %v155_v52, %v156_v60  ;;  %v239_v15 = vmul.f32 %v1092_v0, %v1085_v58  ;;  %v1117_v21 = vld [vmem:[#allocation2 + $0x7] ss:$0 sm:$0xff]  ;;  %v272_v26 = vmul.f32 %v1094_v7, %v136_v55 }
  0xc1   :  { %v304_v27 = vmul.f32 %v1096_v8, %v136_v55  ;;  %v1126_v28 = vmul.f32 %v1087_v61, %v1083_v57  ;;  %v1130_v29 = vmul.f32 %v1092_v0, %v1083_v57  ;;  %v336_v32 = vmul.f32 %v1106_v13, %v136_v55 }
  0xc2   :  { %v158_v16 = vmul.f32 %v151_v1, %v1089_v62  ;;  %v159_v17 = vmul.f32 %v151_v1, %v1083_v57  ;;  %v160_v18 = vmul.f32 %v151_v1, %v1085_v58  ;;  %v161_v19 = vmul.f32 %v151_v1, %v136_v55 }
  0xc3   :  { %v162_v22 = vmul.f32 %v157_v5, %v1089_v62  ;;  %v163_v23 = vmul.f32 %v157_v5, %v1083_v57  ;;  %v164_v24 = vmul.f32 %v157_v5, %v1085_v58  ;;  %v165_v25 = vmul.f32 %v157_v5, %v136_v55 }
  0xc4   :  { %v368_v33 = vmul.f32 %v1115_v20, %v136_v55  ;;  %v400_v36 = vmul.f32 %v1117_v21, %v136_v55  ;;  %v271_v37 = vmul.f32 %v1094_v7, %v1085_v58  ;;  %v303_v45 = vmul.f32 %v1096_v8, %v1085_v58 }
  0xc5   :  { %v1132_v30 = vmax.f32 %v158_v16, %v162_v22  ;;  %v169_v31 = vmax.f32 %v161_v19, %v165_v25  ;;  %v1136_v34 = vmax.f32 %v159_v17, %v163_v23  ;;  %v1138_v35 = vmax.f32 %v160_v18, %v164_v24  ;;  %v1159_v19 = vld [vmem:[#allocation3] ss:$0 sm:$0xff] }
  0xc6   :  { %v335_v53 = vmul.f32 %v1106_v13, %v1085_v58  ;;  %v399_v22 = vmul.f32 %v1117_v21, %v1085_v58 }
  0xc7   :  { %v180_v38 = vsub.f32 %v176_v63, %v169_v31  ;;  %v212_v39 = vsub.f32 %v208_v11, %v169_v31  ;;  %v244_v40 = vsub.f32 %v240_v12, %v169_v31  ;;  %v276_v41 = vsub.f32 %v272_v26, %v169_v31  ;;  %v1167_v26 = vld [vmem:[#allocation3 + $0x1] ss:$0 sm:$0xff] }
  0xc8   :  { %v308_v42 = vsub.f32 %v304_v27, %v169_v31  ;;  %v340_v43 = vsub.f32 %v336_v32, %v169_v31  ;;  %v372_v44 = vsub.f32 %v368_v33, %v169_v31  ;;  %v404_v49 = vsub.f32 %v400_v36, %v169_v31 }
  0xc9   :  { %v187_v46 = vmul.f32 1.442695, %v180_v38  ;;  %v219_v47 = vmul.f32 1.442695, %v212_v39  ;;  %v251_v48 = vmul.f32 1.442695, %v244_v40  ;;  %v179_v52 = vsub.f32 %v175_v9, %v1138_v35 }
  0xca   :  { %v283_v51 = vmul.f32 1.442695, %v276_v41  ;;  %v315_v54 = vmul.f32 1.442695, %v308_v42  ;;  %v211_v55 = vsub.f32 %v207_v14, %v1138_v35  ;;  %v243_v59 = vsub.f32 %v239_v15, %v1138_v35  ;;  %v1175_v41 = vld [vmem:[#allocation3 + $0x3] ss:$0 sm:$0xff] }
  0xcb   :  { %882 = vpow2.f32 %v187_v46  ;;  %v347_v60 = vmul.f32 1.442695, %v340_v43  ;;  %v379_v63 = vmul.f32 1.442695, %v372_v44  ;;  %v275_v1 = vsub.f32 %v271_v37, %v1138_v35 }
  0xcc   :  { %884 = vpow2.f32 %v219_v47  ;;  %v411_v5 = vmul.f32 1.442695, %v404_v49  ;;  %v185_v11 = vmul.f32 1.442695, %v179_v52  ;;  %v307_v12 = vsub.f32 %v303_v45, %v1138_v35  ;;  %v1185_v52 = vld [vmem:[#allocation3 + $0x5] ss:$0 sm:$0xff] }
  0xcd   :  { %886 = vpow2.f32 %v251_v48  ;;  %v217_v9 = vmul.f32 1.442695, %v211_v55  ;;  %v249_v16 = vmul.f32 1.442695, %v243_v59  ;;  %v339_v17 = vsub.f32 %v335_v53, %v1138_v35  ;;  %v1182_v48 = vld [vmem:[#allocation3 + $0x4] ss:$0 sm:$0xff] }
  0xce   :  { %888 = vpow2.f32 %v283_v51  ;;  %v281_v18 = vmul.f32 1.442695, %v275_v1  ;;  %v367_v14 = vmul.f32 %v1115_v20, %v1085_v58  ;;  %v178_v15 = vsub.f32 %v1102_v10, %v1136_v34  ;;  %v1187_v53 = vld [vmem:[#allocation3 + $0x6] ss:$0 sm:$0xff] }
  0xcf   :  { %890 = vpow2.f32 %v315_v54  ;;  %v210_v23 = vsub.f32 %v1126_v28, %v1136_v34  ;;  %v242_v24 = vsub.f32 %v1130_v29, %v1136_v34  ;;  %v313_v27 = vmul.f32 1.442695, %v307_v12  ;;  %v1173_v29 = vld [vmem:[#allocation3 + $0x2] ss:$0 sm:$0xff] }
  0xd0   :  { %892 = vpow2.f32 %v347_v60  ;;  %v345_v31 = vmul.f32 1.442695, %v339_v17  ;;  %v371_v10 = vsub.f32 %v367_v14, %v1138_v35  ;;  %v403_v58 = vsub.f32 %v399_v22, %v1138_v35  ;;  %v1195_v22 = vld [vmem:[#allocation3 + $0x7] ss:$0 sm:$0xff] }
  0xd1   :  { %v883_v25 = vpop.eup %882  ;;  %894 = vpow2.f32 %v379_v63  ;;  %v183_v36 = vmul.f32 1.442695, %v178_v15  ;;  %v215_v39 = vmul.f32 1.442695, %v210_v23  ;;  %v1177_v43 = vmul.f32 1.442695, %v242_v24 }
  0xd2   :  { %v885_v32 = vpop.eup %884  ;;  %v197_v33 = vmul.f32 %v883_v25, %v1159_v19  ;;  %896 = vpow2.f32 %v411_v5  ;;  %v377_v42 = vmul.f32 1.442695, %v371_v10  ;;  %v270_v44 = vmul.f32 %v1094_v7, %v1083_v57 }
  0xd3   :  { %v887_v37 = vpop.eup %886  ;;  %v224_v28 = vadd.f32 %v885_v32, %v883_v25  ;;  %v229_v38 = vmul.f32 %v885_v32, %v1167_v26  ;;  %898 = vpow2.f32 %v185_v11  ;;  %v409_v54 = vmul.f32 1.442695, %v403_v58 }
  0xd4   :  { %v889_v40 = vpop.eup %888  ;;  %900 = vpow2.f32 %v217_v9  ;;  %v261_v47 = vmul.f32 %v887_v37, %v1173_v29  ;;  %v274_v55 = vsub.f32 %v270_v44, %v1136_v34  ;;  %v302_v9 = vmul.f32 %v1096_v8, %v1083_v57 }
  0xd5   :  { %v891_v35 = vpop.eup %890  ;;  %v233_v45 = vadd.f32 %v229_v38, %v197_v33  ;;  %v256_v46 = vadd.f32 %v887_v37, %v224_v28  ;;  %902 = vpow2.f32 %v249_v16  ;;  %v293_v51 = vmul.f32 %v889_v40, %v1175_v41 }
  0xd6   :  { %v893_v49 = vpop.eup %892  ;;  %904 = vpow2.f32 %v281_v18  ;;  %v325_v1 = vmul.f32 %v891_v35, %v1182_v48  ;;  %v279_v14 = vmul.f32 1.442695, %v274_v55  ;;  %v306_v24 = vsub.f32 %v302_v9, %v1136_v34 }
  0xd7   :  { %v895_v59 = vpop.eup %894  ;;  %v265_v60 = vadd.f32 %v261_v47, %v233_v45  ;;  %v288_v63 = vadd.f32 %v889_v40, %v256_v46  ;;  %906 = vpow2.f32 %v313_v27  ;;  %v357_v11 = vmul.f32 %v893_v49, %v1185_v52 }
  0xd8   :  { %v897_v5 = vpop.eup %896  ;;  %v389_v12 = vmul.f32 %v895_v59, %v1187_v53  ;;  %908 = vpow2.f32 %v345_v31  ;;  %v334_v25 = vmul.f32 %v1106_v13, %v1083_v57 }
  0xd9   :  { %v899_v16 = vpop.eup %898  ;;  %v297_v17 = vadd.f32 %v293_v51, %v265_v60  ;;  %v320_v18 = vadd.f32 %v891_v35, %v288_v63  ;;  %910 = vpow2.f32 %v377_v42  ;;  %v421_v37 = vmul.f32 %v897_v5, %v1195_v22 }
  0xda   :  { %v901_v15 = vpop.eup %900  ;;  %v196_v23 = vmul.f32 %v899_v16, %v1159_v19  ;;  %912 = vpow2.f32 %v409_v54  ;;  %v338_v38 = vsub.f32 %v334_v25, %v1136_v34  ;;  %v366_v51 = vmul.f32 %v1115_v20, %v1083_v57 }
  0xdb   :  { %v903_v27 = vpop.eup %902  ;;  %v329_v31 = vadd.f32 %v325_v1, %v297_v17  ;;  %v352_v10 = vadd.f32 %v893_v49, %v320_v18  ;;  %v223_v32 = vadd.f32 %v901_v15, %v899_v16  ;;  %v228_v33 = vmul.f32 %v901_v15, %v1167_v26 }
  0xdc   :  { %v905_v58 = vpop.eup %904  ;;  %v260_v28 = vmul.f32 %v903_v27, %v1173_v29  ;;  %914 = vpow2.f32 %v183_v36  ;;  %v311_v49 = vmul.f32 1.442695, %v306_v24 }
  0xdd   :  { %v907_v40 = vpop.eup %906  ;;  %v361_v42 = vadd.f32 %v357_v11, %v329_v31  ;;  %v384_v44 = vadd.f32 %v895_v59, %v352_v10  ;;  %v232_v35 = vadd.f32 %v228_v33, %v196_v23  ;;  %v255_v45 = vadd.f32 %v903_v27, %v223_v32 }
  0xde   :  { %v909_v46 = vpop.eup %908  ;;  %v292_v47 = vmul.f32 %v905_v58, %v1175_v41  ;;  %916 = vpow2.f32 %v215_v39  ;;  %v324_v36 = vmul.f32 %v907_v40, %v1182_v48  ;;  %v343_v59 = vmul.f32 1.442695, %v338_v38 }
  0xdf   :  { %v911_v54 = vpop.eup %910  ;;  %v416_v55 = vadd.f32 %v897_v5, %v384_v44  ;;  %v264_v60 = vadd.f32 %v260_v28, %v232_v35  ;;  %v287_v63 = vadd.f32 %v905_v58, %v255_v45  ;;  %v393_v9 = vadd.f32 %v389_v12, %v361_v42 }
  0xe0   :  { %v913_v1 = vpop.eup %912  ;;  %918 = vpow2.f32 %v1177_v43  ;;  %v370_v11 = vsub.f32 %v366_v51, %v1136_v34  ;;  %v356_v17 = vmul.f32 %v909_v46, %v1185_v52  ;;  %v388_v15 = vmul.f32 %v911_v54, %v1187_v53 }
  0xe1   :  { %920 = vrcp.f32 %v416_v55  ;;  %v296_v16 = vadd.f32 %v292_v47, %v264_v60  ;;  %v319_v39 = vadd.f32 %v907_v40, %v287_v63  ;;  %v398_v23 = vmul.f32 %v1117_v21, %v1083_v57 }
  0xe2   :  { %v915_v18 = vpop.eup %914  ;;  %922 = vpow2.f32 %v279_v14  ;;  %v375_v5 = vmul.f32 1.442695, %v370_v11  ;;  %v173_v31 = vmul.f32 %v1081_v56, %v1089_v62  ;;  %v205_v10 = vmul.f32 %v1087_v61, %v1089_v62 }
  0xe3   :  { %v328_v24 = vadd.f32 %v324_v36, %v296_v16  ;;  %v351_v12 = vadd.f32 %v909_v46, %v319_v39  ;;  %v195_v43 = vmul.f32 %v915_v18, %v1159_v19  ;;  %924 = vpow2.f32 %v311_v49 }
  0xe4   :  { %v917_v25 = vpop.eup %916  ;;  %926 = vpow2.f32 %v343_v59  ;;  %v402_v27 = vsub.f32 %v398_v23, %v1136_v34  ;;  %v425_v28 = vadd.f32 %v421_v37, %v393_v9  ;;  %v177_v40 = vsub.f32 %v173_v31, %v1132_v30 }
  0xe5   :  { %v360_v14 = vadd.f32 %v356_v17, %v328_v24  ;;  %v383_v32 = vadd.f32 %v911_v54, %v351_v12  ;;  %v222_v33 = vadd.f32 %v917_v25, %v915_v18  ;;  %v227_v57 = vmul.f32 %v917_v25, %v1167_v26 }
  0xe6   :  { %v919_v58 = vpop.eup %918  ;;  %928 = vpow2.f32 %v375_v5  ;;  %v407_v38 = vmul.f32 1.442695, %v402_v27  ;;  %v209_v56 = vsub.f32 %v205_v10, %v1132_v30  ;;  %v181_v47 = vmul.f32 1.442695, %v177_v40 }
  0xe7   :  { %v921_v42 = vpop.eup %920  ;;  %v415_v44 = vadd.f32 %v913_v1, %v383_v32  ;;  %v231_v34 = vadd.f32 %v227_v57, %v195_v43  ;;  %v254_v35 = vadd.f32 %v919_v58, %v222_v33  ;;  %v259_v61 = vmul.f32 %v919_v58, %v1173_v29 }
  0xe8   :  { %v923_v45 = vpop.eup %922  ;;  %v433_v46 = vmul.f32 %v921_v42, %v425_v28  ;;  %930 = vpow2.f32 %v407_v38  ;;  %v392_v51 = vadd.f32 %v388_v15, %v360_v14  ;;  %v420_v37 = vmul.f32 %v913_v1, %v1195_v22 }
  0xe9   :  { %v925_v49 = vpop.eup %924  ;;  %932 = vrcp.f32 %v415_v44  ;;  %v286_v54 = vadd.f32 %v923_v45, %v254_v35  ;;  %v263_v63 = vadd.f32 %v259_v61, %v231_v34  ;;  %v291_v36 = vmul.f32 %v923_v45, %v1175_v41 }
  0xea   :  { %v927_v55 = vpop.eup %926  ;;  %v442_v60 = vmul.f32 %v1145_v50, %v433_v46  ;;  %934 = vpow2.f32 %v181_v47  ;;  %v323_v59 = vmul.f32 %v925_v49, %v1182_v48  ;;  %v213_v11 = vmul.f32 1.442695, %v209_v56 }
  0xeb   :  { %v318_v9 = vadd.f32 %v925_v49, %v286_v54  ;;  %v237_v16 = vmul.f32 %v1092_v0, %v1089_v62  ;;  %v295_v1 = vadd.f32 %v291_v36, %v263_v63  ;;  %v269_v18 = vmul.f32 %v1094_v7, %v1089_v62 }
  0xec   :  { %v929_v39 = vpop.eup %928  ;;  %v446_v17 = vadd.f32 %v442_v60, %v1063_v2  ;;  %v301_v15 = vmul.f32 %v1096_v8, %v1089_v62  ;;  %v424_v5 = vadd.f32 %v420_v37, %v392_v51  ;;  %936 = vpow2.f32 %v213_v11 }
  0xed   :  { %v350_v23 = vadd.f32 %v927_v55, %v318_v9  ;;  %v241_v24 = vsub.f32 %v237_v16, %v1132_v30  ;;  %v327_v43 = vadd.f32 %v323_v59, %v295_v1  ;;  %v355_v0 = vmul.f32 %v927_v55, %v1185_v52 }
  0xee   :  { %v931_v12 = vpop.eup %930  ;;  %499 = vmatpush.msra.mxu1 %v446_v17  ;;  %v273_v25 = vsub.f32 %v269_v18, %v1132_v30  ;;  %v305_v2 = vsub.f32 %v301_v15, %v1132_v30  ;;  %v387_v7 = vmul.f32 %v929_v39, %v1187_v53  ;;  %v333_v8 = vmul.f32 %v1106_v13, %v1089_v62 }
  0xef   :  { %v933_v27 = vpop.eup %932  ;;  %v382_v31 = vadd.f32 %v929_v39, %v350_v23  ;;  %v245_v10 = vmul.f32 1.442695, %v241_v24  ;;  %v359_v33 = vadd.f32 %v355_v0, %v327_v43  ;;  %v365_v58 = vmul.f32 %v1115_v20, %v1089_v62 }
  0xf0   :  { %v935_v14 = vpop.eup %934  ;;  %v432_v32 = vmul.f32 %v933_v27, %v424_v5  ;;  %v277_v57 = vmul.f32 1.442695, %v273_v25  ;;  %v309_v38 = vmul.f32 1.442695, %v305_v2  ;;  %v337_v40 = vsub.f32 %v333_v8, %v1132_v30 }
  0xf1   :  { %v414_v28 = vadd.f32 %v931_v12, %v382_v31  ;;  %938 = vpow2.f32 %v245_v10  ;;  %v194_v44 = vmul.f32 %v935_v14, %v1159_v19  ;;  %v369_v34 = vsub.f32 %v365_v58, %v1132_v30  ;;  %v449_v10 = vld [vmem:[#allocation7 + $0x70] sm:$0xff]  ;;  %v463_v58 = vpop.permute.xlu2 %462 }
  0xf2   :  { %v441_v42 = vmul.f32 %v1145_v50, %v432_v32  ;;  %940 = vpow2.f32 %v277_v57  ;;  %v937_v13 = vpop.eup %936  ;;  %v341_v35 = vmul.f32 1.442695, %v337_v40  ;;  %v397_v56 = vmul.f32 %v1117_v21, %v1089_v62  ;;  %v473_v32 = vpop.permute.xlu0 %472 }
  0xf3   :  { %942 = vrcp.f32 %v414_v28  ;;  %v391_v45 = vadd.f32 %v387_v7, %v359_v33  ;;  %v221_v46 = vadd.f32 %v937_v13, %v935_v14  ;;  %v226_v61 = vmul.f32 %v937_v13, %v1167_v26  ;;  %v447_v7 = vld [vmem:[#allocation7 + $0x60] sm:$0xff] }
  0xf4   :  { %v445_v20 = vadd.f32 %v441_v42, %v1065_v3  ;;  %944 = vpow2.f32 %v309_v38  ;;  %v373_v47 = vmul.f32 1.442695, %v369_v34  ;;  %v401_v49 = vsub.f32 %v397_v56, %v1132_v30  ;;  %v516_v42 = vld [vmem:[#allocation7 + $0xa0] sm:$0xff] }
  0xf5   :  { %v419_v19 = vmul.f32 %v931_v12, %v1195_v22  ;;  %v230_v51 = vadd.f32 %v226_v61, %v194_v44  ;;  %946 = vpow2.f32 %v341_v35  ;;  %v517_v44 = vld [vmem:[#allocation7 + $0xa8] sm:$0xff] }
  0xf6   :  { %500 = vmatpush.msra.mxu1 %v445_v20  ;;  %v405_v54 = vmul.f32 1.442695, %v401_v49  ;;  %948 = vpow2.f32 %v373_v47  ;;  %v560_v61 = vld [vmem:[#allocation7 + $0xc8] sm:$0xff]  ;;  %v561_v47 = vld [vmem:[#allocation7 + $0xd0] sm:$0xff]  ;;  %v562_v49 = vld [vmem:[#allocation7 + $0xd8] sm:$0xff] }
  0xf7   :  { %v939_v37 = vpop.eup %938  ;;  %v423_v60 = vadd.f32 %v419_v19, %v391_v45 }
  0xf8   :  { %v941_v55 = vpop.eup %940  ;;  %v253_v62 = vadd.f32 %v939_v37, %v221_v46  ;;  %v258_v3 = vmul.f32 %v939_v37, %v1173_v29  ;;  %950 = vpow2.f32 %v405_v54  ;;  %v559_v46 = vld [vmem:[#allocation7 + $0xc0] sm:$0xff] }
  0xf9   :  { %v943_v21 = vpop.eup %942  ;;  %v290_v9 = vmul.f32 %v941_v55, %v1175_v41  ;;  %v523_v20 = vpop.permute.xlu2 %522 }
  0xfa   :  { %v431_v63 = vmul.f32 %v943_v21, %v423_v60  ;;  %v262_v26 = vadd.f32 %v258_v3, %v230_v51  ;;  %v285_v36 = vadd.f32 %v941_v55, %v253_v62  ;;  %v945_v30 = vpop.eup %944  ;;  %v458_v38 = vpop.permute.xlu0 %457 }
  0xfb   :  { %v947_v59 = vpop.eup %946  ;;  %v322_v17 = vmul.f32 %v945_v30, %v1182_v48 }
  0xfc   :  { %v440_v11 = vmul.f32 %v1145_v50, %v431_v63  ;;  %v294_v16 = vadd.f32 %v290_v9, %v262_v26  ;;  %v317_v39 = vadd.f32 %v945_v30, %v285_v36  ;;  %v949_v15 = vpop.eup %948  ;;  %v354_v5 = vmul.f32 %v947_v59, %v1185_v52  ;;  %v448_v52 = vld [vmem:[#allocation7 + $0x68] sm:$0xff] }
  0xfd   :  { %v386_v43 = vmul.f32 %v949_v15, %v1187_v53  ;;  %v450_v53 = vld [vmem:[#allocation7 + $0x78] sm:$0xff] }
  0xfe   :  { %v444_v1 = vadd.f32 %v440_v11, %v1068_v4  ;;  %v326_v18 = vadd.f32 %v322_v17, %v294_v16  ;;  %v349_v29 = vadd.f32 %v947_v59, %v317_v39  ;;  %v951_v24 = vpop.eup %950 }
  0xff   :  { %v418_v25 = vmul.f32 %v951_v24, %v1195_v22 }
 0x100   :  { %501 = vmatpush.msra.mxu1 %v444_v1  ;;  %v381_v23 = vadd.f32 %v949_v15, %v349_v29  ;;  %v358_v41 = vadd.f32 %v354_v5, %v326_v18 }
 0x101   :  { %v575_v62 = vpop.permute.xlu2 %574 }
 0x102   :  { %v413_v12 = vadd.f32 %v951_v24, %v381_v23  ;;  %v390_v0 = vadd.f32 %v386_v43, %v358_v41  ;;  %v585_v37 = vpop.permute.xlu0 %584  ;;  %v641_v23 = vld [vmem:[#allocation7 + $0x100] sm:$0xff]  ;;  %v642_v24 = vld [vmem:[#allocation7 + $0x108] sm:$0xff] }
 0x104   :  { %952 = vrcp.f32 %v413_v12  ;;  %v422_v2 = vadd.f32 %v418_v25, %v390_v0 }
 0x109   :  { %v648_v25 = vpop.permute.xlu2 %647 }
 0x10a   :  { %v953_v48 = vpop.eup %952  ;;  %v570_v21 = vpop.permute.xlu0 %569 }
 0x10b   :  { %v430_v27 = vmul.f32 %v953_v48, %v422_v2  ;;  %v684_v48 = vld [vmem:[#allocation7 + $0x120] sm:$0xff] }
 0x10d   :  { %v439_v4 = vmul.f32 %v1145_v50, %v430_v27 }
 0x10f   :  { %v443_v31 = vadd.f32 %v439_v4, %v1071_v6  ;;  %v468_v6 = vpop.permute.xlu1 %467 }
 0x111   :  { %502 = vmatpush.msra.mxu1 %v443_v31 }
 0x112   :  { %838 = vmatmul.msk.f32.vlgmr.msra.gmra.mxu1 %vm90_vm0, %v447_v7  ;;  %v689_v27 = vpop.permute.xlu0 %688  ;;  %v714_v7 = vld [vmem:[#allocation7 + $0x130] sm:$0xff] }
 0x117   :  { %v528_v13 = vpop.permute.xlu1 %527 }
 0x11a   :  { %839 = vmatmul.msk.f32.gmra.mxu1 %vm90_vm0, %v448_v52  ;;  %v715_v52 = vld [vmem:[#allocation7 + $0x138] sm:$0xff] }
 0x11f   :  { %v580_v55 = vpop.permute.xlu1 %579 }
 0x122   :  { %840 = vmatmul.msk.f32.gmra.mxu1 %vm90_vm0, %v449_v10 }
 0x127   :  { %v653_v12 = vpop.permute.xlu1 %652 }
 0x12a   :  { %841 = vmatmul.msk.f32.gmra.mxu1 %vm90_vm0, %v450_v53  ;;  %v721_v53 = vpop.permute.xlu2 %720 }
 0x18f   :  { %v504_v22 = vpop.f32.mrf.mxu1 }
 0x190   :  { %v505_v40 = vadd.f32 %v504_v22, %v458_v38  ;;  %v764_v38 = vld [vmem:[#allocation7 + $0x150] sm:$0x1] }
 0x197   :  { %v507_v8 = vpop.f32.mrf.mxu1 }
 0x198   :  { %v508_v28 = vadd.f32 %v507_v8, %v463_v58  ;;  %v726_v8 = vpop.permute.xlu1 %725 }
 0x19f   :  { %v510_v14 = vpop.f32.mrf.mxu1 }
 0x1a0   :  { %v511_v57 = vadd.f32 %v510_v14, %v468_v6 }
 0x1a7   :  { %v513_v50 = vpop.f32.mrf.mxu1 }
 0x1a8   :  { %v514_v33 = vadd.f32 %v513_v50, %v473_v32 }
 0x1aa   :  { %548 = vmatpush.msra.mxu2 %v514_v33 }
 0x1ac   :  { %549 = vmatpush.msra.mxu2 %v511_v57 }
 0x1ae   :  { %550 = vmatpush.msra.mxu2 %v508_v28 }
 0x1b0   :  { %551 = vmatpush.msra.mxu2 %v505_v40 }
 0x1b1   :  { %842 = vmatmul.msk.f32.vlgmr.msra.gmra.mxu2 %vm90_vm0, %v516_v42 }
 0x1b9   :  { %843 = vmatmul.msk.f32.gmra.mxu2 %vm90_vm0, %v517_v44 }
 0x234   :  { %v553_v34 = vpop.f32.mrf.mxu2 }
 0x235   :  { %v554_v45 = vadd.f32 %v553_v34, %v523_v20 }
 0x23c   :  { %v556_v35 = vpop.f32.mrf.mxu2 }
 0x23d   :  { %v557_v56 = vadd.f32 %v556_v35, %v528_v13 }
 0x23f   :  { %614 = vmatpush.msra.mxu3 %v557_v56 }
 0x241   :  { %615 = vmatpush.msra.mxu3 %v554_v45 }
 0x242   :  { %844 = vmatmul.msk.f32.vlgmr.msra.gmra.mxu3 %vm587_vm1, %v559_v46 }
 0x24a   :  { %845 = vmatmul.msk.f32.gmra.mxu3 %vm587_vm1, %v560_v61 }
 0x252   :  { %846 = vmatmul.msk.f32.gmra.mxu3 %vm587_vm1, %v561_v47 }
 0x25a   :  { %847 = vmatmul.msk.f32.gmra.mxu3 %vm587_vm1, %v562_v49 }
 0x2c5   :  { %v617_v19 = vpop.f32.mrf.mxu3 }
 0x2c6   :  { %v618_v26 = vadd.f32 %v617_v19, %v570_v21 }
 0x2c8   :  { %v629_v11 = vadd.f32 %v618_v26, %v505_v40  ;;  %v769_v40 = vpop.permute.xlu0 %768 }
 0x2ca   :  { %v633_v29 = vmul.f32 0.2, %v629_v11 }
 0x2cc   :  { %v637_v5 = vmax.f32 %v629_v11, %v633_v29 }
 0x2cd   :  { %v620_v51 = vpop.f32.mrf.mxu3 }
 0x2ce   :  { %v621_v3 = vadd.f32 %v620_v51, %v575_v62 }
 0x2d0   :  { %v630_v30 = vadd.f32 %v621_v3, %v508_v28 }
 0x2d2   :  { %v634_v1 = vmul.f32 0.2, %v630_v30 }
 0x2d4   :  { %v638_v15 = vmax.f32 %v630_v30, %v634_v1 }
 0x2d5   :  { %v623_v54 = vpop.f32.mrf.mxu3 }
 0x2d6   :  { %v624_v60 = vadd.f32 %v623_v54, %v580_v55 }
 0x2d8   :  { %v631_v36 = vadd.f32 %v624_v60, %v511_v57 }
 0x2da   :  { %v635_v39 = vmul.f32 0.2, %v631_v36 }
 0x2dc   :  { %v639_v18 = vmax.f32 %v631_v36, %v635_v39 }
 0x2dd   :  { %v626_v63 = vpop.f32.mrf.mxu3 }
 0x2de   :  { %v627_v9 = vadd.f32 %v626_v63, %v585_v37 }
 0x2e0   :  { %v632_v59 = vadd.f32 %v627_v9, %v514_v33 }
 0x2e2   :  { %v636_v16 = vmul.f32 0.2, %v632_v59 }
 0x2e4   :  { %v640_v17 = vmax.f32 %v632_v59, %v636_v16 }
 0x2e6   :  { %673 = vmatpush.msrb.mxu2 %v640_v17 }
 0x2e8   :  { %674 = vmatpush.msrb.mxu2 %v639_v18 }
 0x2ea   :  { %675 = vmatpush.msrb.mxu2 %v638_v15 }
 0x2ec   :  { %676 = vmatpush.msrb.mxu2 %v637_v5 }
 0x2ed   :  { %848 = vmatmul.msk.f32.vlgmr.msrb.gmra.mxu2 %vm90_vm0, %v641_v23 }
 0x2f5   :  { %849 = vmatmul.msk.f32.gmra.mxu2 %vm90_vm0, %v642_v24 }
 0x370   :  { %v678_v41 = vpop.f32.mrf.mxu2 }
 0x371   :  { %v679_v2 = vadd.f32 %v678_v41, %v648_v25 }
 0x378   :  { %v681_v43 = vpop.f32.mrf.mxu2 }
 0x379   :  { %v682_v0 = vadd.f32 %v681_v43, %v653_v12 }
 0x37b   :  { %708 = vmatpush.msrb.mxu3 %v682_v0 }
 0x37d   :  { %709 = vmatpush.msrb.mxu3 %v679_v2 }
 0x37e   :  { %850 = vmatmul.msk.f32.vlgmr.msrb.gmra.mxu3 %vm587_vm1, %v684_v48 }
 0x401   :  { %v711_v4 = vpop.f32.mrf.mxu3 }
 0x402   :  { %v712_v31 = vadd.f32 %v711_v4, %v689_v27 }
 0x404   :  { %750 = vmatpush.msrb.mxu1 %v712_v31 }
 0x405   :  { %851 = vmatmul.msk.f32.vlgmr.msrb.gmra.mxu1 %vm728_vm2, %v714_v7 }
 0x40d   :  { %852 = vmatmul.msk.f32.gmra.mxu1 %vm728_vm2, %v715_v52 }
 0x482   :  { %v752_v10 = vpop.f32.mrf.mxu1 }
 0x483   :  { %v753_v22 = vadd.f32 %v752_v10, %v721_v53 }
 0x485   :  { %v758_v32 = vadd.f32 %v753_v22, %v679_v2 }
 0x487   :  { %v760_v6 = vmul.f32 0.2, %v758_v32 }
 0x489   :  { %v762_v28 = vmax.f32 %v758_v32, %v760_v6 }
 0x48a   :  { %v755_v14 = vpop.f32.mrf.mxu1 }
 0x48b   :  { %v756_v50 = vadd.f32 %v755_v14, %v726_v8 }
 0x48d   :  { %v759_v33 = vadd.f32 %v756_v50, %v682_v0 }
 0x48f   :  { %v761_v57 = vmul.f32 0.2, %v759_v33 }
 0x491   :  { %v763_v58 = vmax.f32 %v759_v33, %v761_v57 }
 0x493   :  { %788 = vmatpush.msra.mxu2 %v763_v58 }
 0x495   :  { %789 = vmatpush.msra.mxu2 %v762_v28 }
 0x496   :  { %853 = vmatmul.msk.f32.vlgmr.msra.gmra.mxu2 %vm587_vm1, %v764_v38 }
 0x519   :  { %v791_v42 = vpop.f32.mrf.mxu2 }
 0x51a   :  { %v792_v44 = vadd.f32 %v791_v42, %v769_v40 }
 0x51c   :  { %v854_v34 = vmul.f32 -1.442695, %v792_v44 }
 0x51e   :  { %954 = vpow2.f32 %v854_v34 }
 0x524   :  { %v955_v13 = vpop.eup %954 }
 0x525   :  { %v797_v35 = vadd.f32 1.0, %v955_v13 }
 0x527   :  { %956 = vrcp.f32 %v797_v35  ;;  %v809_v46 = vand.u32 2147483648, %v797_v35  ;;  %v807_v47 = vand.u32 2147483647, %v797_v35  ;;  %vm803_vm4 = vweird.f32 %v797_v35 }
 0x529   :  { %v810_v19 = vor.u32 1.1754944e-38, %v809_v46  ;;  %vm808_vm6 = vcmp.eq.f32.partialorder %v807_v47, 8.507059e+37 }
 0x52d   :  { %v957_v56 = vpop.eup %956 }
 0x52e   :  { %v799_v20 = vmul.f32 %v957_v56, %v797_v35  ;;  %vm804_vm3 = vweird.f32 %v957_v56 }
 0x52f   :  { %vm805_vm5 = vmor %vm803_vm4, %vm804_vm3 }
 0x530   :  { %v800_v45 = vsub.f32 1.0, %v799_v20 }
 0x532   :  { %v801_v61 = vmul.f32 %v957_v56, %v800_v45 }
 0x534   :  { %v802_v49 = vadd.f32 %v957_v56, %v801_v61 }
 0x536   :  { %v806_v51 = vsel %vm805_vm5, %v957_v56, %v802_v49 }
 0x537   :  { %v811_v37 = vsel %vm808_vm6, %v810_v19, %v806_v51 }
 0x538   :  { %813 = vst [vmem:[#allocation9] sm:$0x1] %v811_v37 }
 0x539   :  { %824 = dma.vmem_to_hbm [thread:$0]  %s820_s21, 16, %s822_s24, [#allocation6]  }
 0x53a   :  { %1034 = dma.done.wait [#allocation6], 16  }
 0x53b   :  { %1035 = vsyncadd [#allocation6], 4294967280 }
 0x53c   :  { %829 = vsyncpa [#allocation5], 1 }
 0x53d   :  { %830 = vsyncpa [#allocation8], 1 }
 0x53e   :  { %831 = vsyncpa [#allocation6], 1 }

</bundles_post_ra>
